<compile_context>
chip_gen: v5e
topology: v5e:2x2
jax: 0.10.0
libtpu: 0.0.40
codegen_flags: <defaults>
</compile_context>

<pallas_src>
import math
import functools

import jax
import jax.numpy as jnp
from jax import lax
from jax.experimental import pallas as pl
from jax.experimental.pallas import tpu as pltpu


_LOGIT_CLIP = float(math.log((1.0 - 1e-4) / 1e-4))   # sigmoid(+-clip) = 1 -+ 1e-4


# ---------------------------------------------------------------------------
# Pallas kernel: one grid step == (image b, anchor tile a).
# ---------------------------------------------------------------------------
def _model_with_loss_kernel(feat_ref, w1t_ref, b1_ref, wh_ref, bh_ref,
                            anc_ref, ann_ref, annt_ref,
                            cls_out_ref, reg_out_ref,
                            cls_acc_ref, reg_acc_ref, npos_acc_ref,
                            *, num_classes, c_pad):
    C = num_classes
    TA = anc_ref.shape[1]
    M = ann_ref.shape[1]
    alpha = 0.25                                   # focal alpha; gamma=2 as x*x

    a_idx = pl.program_id(1)
    n_a = pl.num_programs(1)

    # ----- per-image accumulators: init on first A-tile ------------------------
    @pl.when(a_idx == 0)
    def _init():
        cls_acc_ref[...] = jnp.zeros_like(cls_acc_ref)
        reg_acc_ref[...] = jnp.zeros_like(reg_acc_ref)
        npos_acc_ref[...] = jnp.zeros_like(npos_acc_ref)

    # ----- anchor geometry for this tile, lane-dense (1, TA) rows --------------
    anc = anc_ref[...]                             # (4, TA): y1, x1, y2, x2
    ay1, ax1, ay2, ax2 = anc[0:1], anc[1:2], anc[2:3], anc[3:4]
    a_w = ax2 - ax1
    a_h = ay2 - ay1
    a_cx = ax1 + 0.5 * a_w
    a_cy = ay1 + 0.5 * a_h
    area_a = a_w * a_h
    inv_aw = 1.0 / a_w                             # exact: only 2 (1,TA) divides/tile
    inv_ah = 1.0 / a_h

    # ----- prediction heads on the MXU (bf16 operands, f32 accumulate) ---------
    feat = feat_ref[0]                                          # (Cin, TA) bf16
    hidden = jnp.maximum(
        jnp.dot(w1t_ref[...], feat, preferred_element_type=jnp.float32)
        + b1_ref[...], 0.0)                                     # (HID, TA) f32
    head = jnp.dot(wh_ref[...], hidden.astype(jnp.bfloat16),
                   preferred_element_type=jnp.float32) + bh_ref[...]  # (NPAD, TA)
    logits = head[:C, :]                                        # (C, TA) aligned view
    regression = head[c_pad:c_pad + 4, :]                       # (4, TA) aligned view

    # sigmoid + BCE pieces with one exp + one log per element; logit clip
    # reproduces the reference clamp of p to [1e-4, 1 - 1e-4].
    x = jnp.clip(logits, -_LOGIT_CLIP, _LOGIT_CLIP)
    e = jnp.exp(-x)
    one_plus_e = 1.0 + e
    p = pl.reciprocal(one_plus_e, approx=True)                  # sigmoid prob
    log1pe = jnp.log(one_plus_e)
    log_p = -log1pe                                             # log(p)
    log_1mp = -x - log1pe                                       # log(1 - p)

    # ----- FocalLoss: anchor <-> GT assignment, lane-dense (M, TA) -------------
    ann = ann_ref[0]                                            # (M, 5): x1,y1,x2,y2,lab
    bx1, by1 = ann[:, 0:1], ann[:, 1:2]
    bx2, by2 = ann[:, 2:3], ann[:, 3:4]
    blab = ann[:, 4:5]
    valid = blab != -1.0                                        # (M, 1) padding mask

    iw = jnp.maximum(jnp.minimum(ax2, bx2) - jnp.maximum(ax1, bx1), 0.0)   # (M, TA)
    ih = jnp.maximum(jnp.minimum(ay2, by2) - jnp.maximum(ay1, by1), 0.0)
    inter = iw * ih
    area_b = (bx2 - bx1) * (by2 - by1)                          # (M, 1)
    ua = jnp.maximum(area_a + area_b - inter, 1e-8)
    iou = jnp.where(valid, inter * pl.reciprocal(ua, approx=True), -1.0)   # (M, TA)

    iou_max = jnp.max(iou, axis=0, keepdims=True)               # (1, TA)
    midx = lax.broadcasted_iota(jnp.int32, (M, TA), 0)
    argmax = jnp.min(jnp.where(iou == iou_max, midx, M),
                     axis=0, keepdims=True)                     # first max
    onehot = (midx == argmax).astype(jnp.float32)               # (M, TA)

    # gather the assigned annotation per anchor on the MXU: (5, M) @ (M, TA)
    g = jnp.dot(annt_ref[0], onehot, preferred_element_type=jnp.float32)   # (5, TA)
    gx1, gy1, gx2, gy2, glab = g[0:1], g[1:2], g[2:3], g[3:4], g[4:5]

    pos = iou_max >= 0.5                                        # (1, TA)
    neg = iou_max < 0.4
    pos_f = pos.astype(jnp.float32)

    # ----- classification (focal) loss, (C, TA) ---------------------------------
    cls_iota = lax.broadcasted_iota(jnp.int32, (C, TA), 0)
    cls_onehot = (cls_iota == glab.astype(jnp.int32)).astype(jnp.float32)
    # positive -> one-hot, IoU < 0.4 -> 0, in-between -> -1 (ignored)
    targets = jnp.where(pos, cls_onehot, jnp.where(neg, 0.0, -1.0))

    alpha_factor = jnp.where(targets == 1.0, alpha, 1.0 - alpha)
    focal_w = jnp.where(targets == 1.0, 1.0 - p, p)
    focal_w = alpha_factor * focal_w * focal_w                  # gamma = 2
    bce = -(targets * log_p + (1.0 - targets) * log_1mp)
    cls_loss = jnp.where(targets != -1.0, focal_w * bce, 0.0)

    # ----- regression (smooth L1) loss, (4, TA) ----------------------------------
    gw = gx2 - gx1
    gh = gy2 - gy1
    gt_cx = gx1 + 0.5 * gw
    gt_cy = gy1 + 0.5 * gh
    gw = jnp.maximum(gw, 1.0)
    gh = jnp.maximum(gh, 1.0)

    t_dy = (gt_cy - a_cy) * inv_ah
    t_dx = (gt_cx - a_cx) * inv_aw
    t_dh = jnp.log(gh * inv_ah)
    t_dw = jnp.log(gw * inv_aw)
    reg_targets = jnp.concatenate([t_dy, t_dx, t_dh, t_dw], axis=0)       # (4, TA)

    diff = jnp.abs(reg_targets - regression)
    reg_l = jnp.where(diff <= 1.0 / 9.0,
                      0.5 * 9.0 * diff * diff,
                      diff - 0.5 / 9.0)

    # ----- accumulate per-tile partial sums (lane-distributed) ------------------
    cls_acc_ref[...] += jnp.sum(cls_loss, axis=0, keepdims=True)          # (1, TA)
    reg_acc_ref[...] += jnp.sum(reg_l * pos_f, axis=0, keepdims=True)     # (1, TA)
    npos_acc_ref[...] += pos_f

    # ----- finalize on the last A-tile: normalize + lane-dense store ------------
    @pl.when(a_idx == n_a - 1)
    def _finalize():
        num_pos = jnp.sum(npos_acc_ref[...])
        cls_total = jnp.sum(cls_acc_ref[...])
        reg_total = jnp.sum(reg_acc_ref[...])
        cls_b = cls_total / jnp.maximum(num_pos, 1.0)
        reg_b = jnp.where(num_pos > 0.0,
                          reg_total / jnp.maximum(4.0 * num_pos, 1.0),
                          0.0)
        cls_out_ref[...] = jnp.full(cls_out_ref.shape, cls_b, jnp.float32)
        reg_out_ref[...] = jnp.full(reg_out_ref.shape, reg_b, jnp.float32)


# ---------------------------------------------------------------------------
# Wrapper / glue
# ---------------------------------------------------------------------------
def _pallas_forward(feat, w1t, b1c, wht, bhc, anchors_t, ann, ann_t,
                    num_classes, c_pad, a_tile):
    B, cin, A = feat.shape
    hid = w1t.shape[0]
    npad = wht.shape[0]
    M = ann.shape[1]
    n_a = A // a_tile

    kernel = functools.partial(_model_with_loss_kernel,
                               num_classes=num_classes, c_pad=c_pad)
    out_tile = jax.ShapeDtypeStruct((B, 8, 128), jnp.float32)

    return pl.pallas_call(
        kernel,
        grid=(B, n_a),
        in_specs=[
            pl.BlockSpec((1, cin, a_tile), lambda b, a: (b, 0, a)),  # features (bf16)
            pl.BlockSpec((hid, cin), lambda b, a: (0, 0)),           # W1^T (bf16)
            pl.BlockSpec((hid, 1), lambda b, a: (0, 0)),             # b1 column (f32)
            pl.BlockSpec((npad, hid), lambda b, a: (0, 0)),          # fused head W (bf16)
            pl.BlockSpec((npad, 1), lambda b, a: (0, 0)),            # fused head bias
            pl.BlockSpec((4, a_tile), lambda b, a: (0, a)),          # anchors y1,x1,y2,x2
            pl.BlockSpec((1, M, 5), lambda b, a: (b, 0, 0)),         # annotations (M,5)
            pl.BlockSpec((1, 5, M), lambda b, a: (b, 0, 0)),         # annotations^T (5,M)
        ],
        out_specs=(pl.BlockSpec((1, 8, 128), lambda b, a: (b, 0, 0)),
                   pl.BlockSpec((1, 8, 128), lambda b, a: (b, 0, 0))),
        out_shape=(out_tile, out_tile),
        scratch_shapes=[
            pltpu.VMEM((1, a_tile), jnp.float32),   # cls loss partial sums
            pltpu.VMEM((1, a_tile), jnp.float32),   # reg loss partial sums
            pltpu.VMEM((1, a_tile), jnp.float32),   # num positive anchors
        ],
        compiler_params=pltpu.CompilerParams(
            dimension_semantics=("parallel", "arbitrary"),
            vmem_limit_bytes=32 * 1024 * 1024,
        ),
    )(feat, w1t, b1c, wht, bhc, anchors_t, ann, ann_t)


def _choose_a_tile(A, target=2048):
    """Largest multiple of 128 that divides A and is <= target.

    Tune `target` per generation: ~1024-2048 on v5e (16 MiB scoped VMEM default),
    4096-8192 (multiple of 256) on v6e, ~2048 on v7x (64 MiB physical VMEM).
    """
    ta = min(A, target)
    ta = (ta // 128) * 128
    while ta > 128 and A % ta != 0:
        ta -= 128
    return max(ta, 128)


def make_anchors_t(H, W, size=4.0):
    ys = jnp.arange(H, dtype=jnp.float32) + 0.5
    xs = jnp.arange(W, dtype=jnp.float32) + 0.5
    cy, cx = jnp.meshgrid(ys, xs, indexing="ij")
    cy = cy.reshape(-1)
    cx = cx.reshape(-1)
    half = size / 2.0
    # (4, A) rows (y1, x1, y2, x2): one anchor per pixel, anchors on lanes
    return jnp.stack([cy - half, cx - half, cy + half, cx + half], axis=0)


def model_with_loss(imgs, annotations, params, a_tile=None):
    """Equivalent of ModelWithLoss.forward -> (cls_loss, reg_loss), shapes (1,)."""
    B, Cin, H, W = imgs.shape
    A = H * W
    HID = params["w1"].shape[1]
    C = params["wc"].shape[1]
    c_pad = ((C + 7) // 8) * 8                      # class rows, sublane-aligned
    npad = ((c_pad + 4 + 7) // 8) * 8               # fused head rows (class | box | pad)

    # TODO(synk): pad A (and mask the tail anchors) when H*W is not a multiple of 128.
    assert A % 128 == 0, "anchor count must be a multiple of 128"
    if a_tile is None:
        a_tile = _choose_a_tile(A)
    assert A % a_tile == 0 and a_tile % 128 == 0

    # NCHW -> (B, Cin, A): channels on sublanes, anchors on lanes, NO pad copy in HBM
    # (block_shape uses the full Cin extent, Mosaic pads K in-vreg); bf16 halves DMA.
    feat = imgs.reshape(B, Cin, A).astype(jnp.bfloat16)

    # layout plumbing: transposed first layer + fused, sublane-aligned head.
    w1t = params["w1"].T.astype(jnp.bfloat16)                         # (HID, Cin)
    b1c = params["b1"].T.astype(jnp.float32)                          # (HID, 1)
    wht = jnp.zeros((npad, HID), jnp.float32)
    wht = wht.at[:C].set(params["wc"].T).at[c_pad:c_pad + 4].set(params["wr"].T)
    bht = jnp.zeros((npad, 1), jnp.float32)
    bht = bht.at[:C].set(params["bc"].T).at[c_pad:c_pad + 4].set(params["br"].T)
    wht = wht.astype(jnp.bfloat16)                                    # (npad, HID)

    anchors_t = make_anchors_t(H, W)                                  # (4, A) f32
    ann = annotations.astype(jnp.float32)                             # (B, M, 5)
    ann_t = jnp.swapaxes(ann, 1, 2)                                   # (B, 5, M)

    cls_tile, reg_tile = _pallas_forward(feat, w1t, b1c, wht, bht,
                                         anchors_t, ann, ann_t, C, c_pad, a_tile)
    cls_b = cls_tile[:, 0, 0]
    reg_b = reg_tile[:, 0, 0]
    # torch.stack(per-image losses).mean(dim=0, keepdim=True) -> shape (1,)
    return jnp.mean(cls_b, keepdims=True), jnp.mean(reg_b, keepdims=True)


def init_params(key, cin, hid, ncls):
    k1, k2, k3 = jax.random.split(key, 3)
    return dict(
        w1=jax.random.normal(k1, (cin, hid), jnp.float32) / math.sqrt(cin),
        b1=jnp.zeros((1, hid), jnp.float32),
        wc=jax.random.normal(k2, (hid, ncls), jnp.float32) / math.sqrt(hid),
        bc=jnp.full((1, ncls), -math.log((1.0 - 0.01) / 0.01), jnp.float32),
        wr=jax.random.normal(k3, (hid, 4), jnp.float32) / math.sqrt(hid),
        br=jnp.zeros((1, 4), jnp.float32),
    )


if __name__ == "__main__":
    B, Cin, H, W = 2, 3, 16, 16      # imgs: NCHW
    C, HID, M = 8, 32, 8             # num_classes, hidden width, max GT per image

    key = jax.random.PRNGKey(0)
    k_img, k_c, k_s, k_l, k_par = jax.random.split(key, 5)

    imgs = jax.random.normal(k_img, (B, Cin, H, W), jnp.float32)

    # annotations: (B, M, 5) = (x1, y1, x2, y2, label); label == -1 marks padding.
    ctr = jax.random.uniform(k_c, (B, M, 2), minval=3.0, maxval=13.0)
    wh = jax.random.uniform(k_s, (B, M, 2), minval=3.0, maxval=6.0)
    labels = jax.random.randint(k_l, (B, M, 1), 0, C).astype(jnp.float32)
    annotations = jnp.concatenate([ctr - wh / 2.0, ctr + wh / 2.0, labels], axis=-1)
    pad = jnp.arange(M) >= (M - 3)   # last 3 slots per image are padding
    annotations = jnp.where(pad[None, :, None],
                            jnp.array([0.0, 0.0, 0.0, 0.0, -1.0], jnp.float32),
                            annotations)

    params = init_params(k_par, Cin, HID, C)

    # a_tile=128 forces 2 A-tiles per image so the accumulate/finalize path runs.
    fwd = jax.jit(functools.partial(model_with_loss, a_tile=128))
    cls_loss, reg_loss = fwd(imgs, annotations, params)
    (cls_loss, reg_loss) = jax.block_until_ready((cls_loss, reg_loss))

    assert cls_loss.shape == (1,) and reg_loss.shape == (1,)
    assert bool(jnp.isfinite(cls_loss).all()) and bool(jnp.isfinite(reg_loss).all())
    print("KERNEL_OK")
</pallas_src>

<mosaic_0001>
module attributes {stable_mosaic.version = 11 : i64} {
  func.func @_model_with_loss_kernel(%arg0: i32, %arg1: i32, %arg2: memref<1x3x128xbf16, #tpu.memory_space<vmem>>, %arg3: memref<32x3xbf16, #tpu.memory_space<vmem>>, %arg4: memref<32x1xf32, #tpu.memory_space<vmem>>, %arg5: memref<16x32xbf16, #tpu.memory_space<vmem>>, %arg6: memref<16x1xf32, #tpu.memory_space<vmem>>, %arg7: memref<4x128xf32, #tpu.memory_space<vmem>>, %arg8: memref<1x8x5xf32, #tpu.memory_space<vmem>>, %arg9: memref<1x5x8xf32, #tpu.memory_space<vmem>>, %arg10: memref<1x8x128xf32, #tpu.memory_space<vmem>>, %arg11: memref<1x8x128xf32, #tpu.memory_space<vmem>>, %arg12: memref<1x128xf32, #tpu.memory_space<vmem>>, %arg13: memref<1x128xf32, #tpu.memory_space<vmem>>, %arg14: memref<1x128xf32, #tpu.memory_space<vmem>>) attributes {dimension_semantics = [#tpu.dimension_semantics<parallel>, #tpu.dimension_semantics<arbitrary>], iteration_bounds = array<i64: 2, 2>, scalar_prefetch = 0 : i64, scratch_operands = 3 : i64, tpu.core_type = #tpu.core_type<tc>, window_params = [{transform_indices = @transform_0, window_bounds = array<i64: 1, 3, 128>}, {pipeline_mode = #tpu.pipeline_mode<synchronous>, transform_indices = @transform_1, window_bounds = array<i64: 32, 3>}, {pipeline_mode = #tpu.pipeline_mode<synchronous>, transform_indices = @transform_2, window_bounds = array<i64: 32, 1>}, {pipeline_mode = #tpu.pipeline_mode<synchronous>, transform_indices = @transform_3, window_bounds = array<i64: 16, 32>}, {pipeline_mode = #tpu.pipeline_mode<synchronous>, transform_indices = @transform_4, window_bounds = array<i64: 16, 1>}, {transform_indices = @transform_5, window_bounds = array<i64: 4, 128>}, {transform_indices = @transform_6, window_bounds = array<i64: 1, 8, 5>}, {transform_indices = @transform_7, window_bounds = array<i64: 1, 5, 8>}, {transform_indices = @transform_8, window_bounds = array<i64: 1, 8, 128>}, {transform_indices = @transform_9, window_bounds = array<i64: 1, 8, 128>}]} {
    %c0_i32 = arith.constant 0 : i32
    %0 = arith.cmpi eq, %arg1, %c0_i32 : i32
    %1 = arith.extui %0 : i1 to i32
    %c0_i32_0 = arith.constant 0 : i32
    %2 = arith.cmpi ne, %1, %c0_i32_0 : i32
    scf.if %2 {
      %cst_74 = arith.constant 0.000000e+00 : f32
      %211 = vector.broadcast %cst_74 : f32 to vector<1x128xf32>
      %c0_75 = arith.constant 0 : index
      %c0_76 = arith.constant 0 : index
      %212 = vector.load %arg12[%c0_75, %c0_76] : memref<1x128xf32, #tpu.memory_space<vmem>>, vector<1x128xf32>
      tpu.vector_store %arg12[%c0_75, %c0_76], %211 {strides = array<i32>} : memref<1x128xf32, #tpu.memory_space<vmem>>, vector<1x128xf32>,
      %cst_77 = arith.constant 0.000000e+00 : f32
      %213 = vector.broadcast %cst_77 : f32 to vector<1x128xf32>
      %c0_78 = arith.constant 0 : index
      %c0_79 = arith.constant 0 : index
      %214 = vector.load %arg13[%c0_78, %c0_79] : memref<1x128xf32, #tpu.memory_space<vmem>>, vector<1x128xf32>
      tpu.vector_store %arg13[%c0_78, %c0_79], %213 {strides = array<i32>} : memref<1x128xf32, #tpu.memory_space<vmem>>, vector<1x128xf32>,
      %cst_80 = arith.constant 0.000000e+00 : f32
      %215 = vector.broadcast %cst_80 : f32 to vector<1x128xf32>
      %c0_81 = arith.constant 0 : index
      %c0_82 = arith.constant 0 : index
      %216 = vector.load %arg14[%c0_81, %c0_82] : memref<1x128xf32, #tpu.memory_space<vmem>>, vector<1x128xf32>
      tpu.vector_store %arg14[%c0_81, %c0_82], %215 {strides = array<i32>} : memref<1x128xf32, #tpu.memory_space<vmem>>, vector<1x128xf32>,
    } else {
    }
    %c0 = arith.constant 0 : index
    %c0_1 = arith.constant 0 : index
    %3 = vector.load %arg7[%c0, %c0_1] : memref<4x128xf32, #tpu.memory_space<vmem>>, vector<4x128xf32>
    %4 = vector.extract_strided_slice %3 {offsets = [0, 0], sizes = [1, 128], strides = [1, 1]} : vector<4x128xf32> to vector<1x128xf32>
    %5 = vector.extract_strided_slice %3 {offsets = [1, 0], sizes = [1, 128], strides = [1, 1]} : vector<4x128xf32> to vector<1x128xf32>
    %6 = vector.extract_strided_slice %3 {offsets = [2, 0], sizes = [1, 128], strides = [1, 1]} : vector<4x128xf32> to vector<1x128xf32>
    %7 = vector.extract_strided_slice %3 {offsets = [3, 0], sizes = [1, 128], strides = [1, 1]} : vector<4x128xf32> to vector<1x128xf32>
    %8 = arith.subf %7, %5 : vector<1x128xf32>
    %9 = arith.subf %6, %4 : vector<1x128xf32>
    %cst = arith.constant 5.000000e-01 : f32
    %10 = vector.broadcast %cst : f32 to vector<1x128xf32>
    %11 = arith.mulf %10, %8 : vector<1x128xf32>
    %12 = arith.addf %5, %11 : vector<1x128xf32>
    %cst_2 = arith.constant 5.000000e-01 : f32
    %13 = vector.broadcast %cst_2 : f32 to vector<1x128xf32>
    %14 = arith.mulf %13, %9 : vector<1x128xf32>
    %15 = arith.addf %4, %14 : vector<1x128xf32>
    %16 = arith.mulf %8, %9 : vector<1x128xf32>
    %cst_3 = arith.constant 1.000000e+00 : f32
    %17 = vector.broadcast %cst_3 : f32 to vector<1x128xf32>
    %18 = arith.divf %17, %8 : vector<1x128xf32>
    %cst_4 = arith.constant 1.000000e+00 : f32
    %19 = vector.broadcast %cst_4 : f32 to vector<1x128xf32>
    %20 = arith.divf %19, %9 : vector<1x128xf32>
    %c0_5 = arith.constant 0 : index
    %c0_6 = arith.constant 0 : index
    %c0_7 = arith.constant 0 : index
    %21 = vector.load %arg2[%c0_5, %c0_6, %c0_7] : memref<1x3x128xbf16, #tpu.memory_space<vmem>>, vector<1x3x128xbf16>
    %22 = vector.shape_cast %21 : vector<1x3x128xbf16> to vector<3x128xbf16>
    %c0_8 = arith.constant 0 : index
    %c0_9 = arith.constant 0 : index
    %23 = vector.load %arg3[%c0_8, %c0_9] : memref<32x3xbf16, #tpu.memory_space<vmem>>, vector<32x3xbf16>
    %cst_10 = arith.constant dense<0.000000e+00> : vector<32x128xf32>
    %24 = tpu.matmul %23, %22, %cst_10 {dimension_numbers = #tpu.dot_dimension_numbers<[1], [0], [0], [1], [0, 0, 1, 1], [], []>} : vector<32x3xbf16>, vector<3x128xbf16>, vector<32x128xf32> -> vector<32x128xf32>
    %c0_11 = arith.constant 0 : index
    %c0_12 = arith.constant 0 : index
    %25 = vector.load %arg4[%c0_11, %c0_12] : memref<32x1xf32, #tpu.memory_space<vmem>>, vector<32x1xf32>
    %26 = vector.broadcast %25 : vector<32x1xf32> to vector<32x128xf32>
    %27 = arith.addf %24, %26 : vector<32x128xf32>
    %cst_13 = arith.constant 0.000000e+00 : f32
    %28 = vector.broadcast %cst_13 : f32 to vector<32x128xf32>
    %29 = arith.maximumf %27, %28 : vector<32x128xf32>
    %c0_14 = arith.constant 0 : index
    %c0_15 = arith.constant 0 : index
    %30 = vector.load %arg5[%c0_14, %c0_15] : memref<16x32xbf16, #tpu.memory_space<vmem>>, vector<16x32xbf16>
    %31 = arith.truncf %29 : vector<32x128xf32> to vector<32x128xbf16>
    %cst_16 = arith.constant dense<0.000000e+00> : vector<16x128xf32>
    %32 = tpu.matmul %30, %31, %cst_16 {dimension_numbers = #tpu.dot_dimension_numbers<[1], [0], [0], [1], [0, 0, 1, 1], [], []>} : vector<16x32xbf16>, vector<32x128xbf16>, vector<16x128xf32> -> vector<16x128xf32>
    %c0_17 = arith.constant 0 : index
    %c0_18 = arith.constant 0 : index
    %33 = vector.load %arg6[%c0_17, %c0_18] : memref<16x1xf32, #tpu.memory_space<vmem>>, vector<16x1xf32>
    %34 = vector.broadcast %33 : vector<16x1xf32> to vector<16x128xf32>
    %35 = arith.addf %32, %34 : vector<16x128xf32>
    %36 = vector.extract_strided_slice %35 {offsets = [0, 0], sizes = [8, 128], strides = [1, 1]} : vector<16x128xf32> to vector<8x128xf32>
    %37 = vector.extract_strided_slice %35 {offsets = [8, 0], sizes = [4, 128], strides = [1, 1]} : vector<16x128xf32> to vector<4x128xf32>
    %cst_19 = arith.constant -9.210240e+00 : f32
    %cst_20 = arith.constant 9.210240e+00 : f32
    %38 = vector.broadcast %cst_19 : f32 to vector<8x128xf32>
    %39 = arith.maximumf %38, %36 : vector<8x128xf32>
    %40 = vector.broadcast %cst_20 : f32 to vector<8x128xf32>
    %41 = arith.minimumf %40, %39 : vector<8x128xf32>
    %cst_21 = arith.constant 0.000000e+00 : f32
    %42 = vector.broadcast %cst_21 : f32 to vector<8x128xf32>
    %43 = arith.subf %42, %41 : vector<8x128xf32>
    %44 = math.exp %43 : vector<8x128xf32>
    %cst_22 = arith.constant 1.000000e+00 : f32
    %45 = vector.broadcast %cst_22 : f32 to vector<8x128xf32>
    %46 = arith.addf %45, %44 : vector<8x128xf32>
    %47 = tpu.reciprocal %46 {approx = true} : vector<8x128xf32> -> vector<8x128xf32>
    %48 = math.log %46 : vector<8x128xf32>
    %cst_23 = arith.constant 0.000000e+00 : f32
    %49 = vector.broadcast %cst_23 : f32 to vector<8x128xf32>
    %50 = arith.subf %49, %48 : vector<8x128xf32>
    %cst_24 = arith.constant 0.000000e+00 : f32
    %51 = vector.broadcast %cst_24 : f32 to vector<8x128xf32>
    %52 = arith.subf %51, %41 : vector<8x128xf32>
    %53 = arith.subf %52, %48 : vector<8x128xf32>
    %c0_25 = arith.constant 0 : index
    %c0_26 = arith.constant 0 : index
    %c0_27 = arith.constant 0 : index
    %54 = vector.load %arg8[%c0_25, %c0_26, %c0_27] : memref<1x8x5xf32, #tpu.memory_space<vmem>>, vector<1x8x5xf32>
    %55 = vector.shape_cast %54 : vector<1x8x5xf32> to vector<8x5xf32>
    %56 = vector.extract_strided_slice %55 {offsets = [0, 0], sizes = [8, 1], strides = [1, 1]} : vector<8x5xf32> to vector<8x1xf32>
    %57 = vector.extract_strided_slice %55 {offsets = [0, 1], sizes = [8, 1], strides = [1, 1]} : vector<8x5xf32> to vector<8x1xf32>
    %58 = vector.extract_strided_slice %55 {offsets = [0, 2], sizes = [8, 1], strides = [1, 1]} : vector<8x5xf32> to vector<8x1xf32>
    %59 = vector.extract_strided_slice %55 {offsets = [0, 3], sizes = [8, 1], strides = [1, 1]} : vector<8x5xf32> to vector<8x1xf32>
    %60 = vector.extract_strided_slice %55 {offsets = [0, 4], sizes = [8, 1], strides = [1, 1]} : vector<8x5xf32> to vector<8x1xf32>
    %cst_28 = arith.constant -1.000000e+00 : f32
    %61 = vector.broadcast %cst_28 : f32 to vector<8x1xf32>
    %62 = arith.cmpf one, %60, %61 : vector<8x1xf32>
    %63 = vector.broadcast %7 : vector<1x128xf32> to vector<8x128xf32>
    %64 = vector.broadcast %58 : vector<8x1xf32> to vector<8x128xf32>
    %65 = arith.minimumf %63, %64 : vector<8x128xf32>
    %66 = vector.broadcast %5 : vector<1x128xf32> to vector<8x128xf32>
    %67 = vector.broadcast %56 : vector<8x1xf32> to vector<8x128xf32>
    %68 = arith.maximumf %66, %67 : vector<8x128xf32>
    %69 = arith.subf %65, %68 : vector<8x128xf32>
    %cst_29 = arith.constant 0.000000e+00 : f32
    %70 = vector.broadcast %cst_29 : f32 to vector<8x128xf32>
    %71 = arith.maximumf %69, %70 : vector<8x128xf32>
    %72 = vector.broadcast %6 : vector<1x128xf32> to vector<8x128xf32>
    %73 = vector.broadcast %59 : vector<8x1xf32> to vector<8x128xf32>
    %74 = arith.minimumf %72, %73 : vector<8x128xf32>
    %75 = vector.broadcast %4 : vector<1x128xf32> to vector<8x128xf32>
    %76 = vector.broadcast %57 : vector<8x1xf32> to vector<8x128xf32>
    %77 = arith.maximumf %75, %76 : vector<8x128xf32>
    %78 = arith.subf %74, %77 : vector<8x128xf32>
    %cst_30 = arith.constant 0.000000e+00 : f32
    %79 = vector.broadcast %cst_30 : f32 to vector<8x128xf32>
    %80 = arith.maximumf %78, %79 : vector<8x128xf32>
    %81 = arith.mulf %71, %80 : vector<8x128xf32>
    %82 = arith.subf %58, %56 : vector<8x1xf32>
    %83 = arith.subf %59, %57 : vector<8x1xf32>
    %84 = arith.mulf %82, %83 : vector<8x1xf32>
    %85 = vector.broadcast %16 : vector<1x128xf32> to vector<8x128xf32>
    %86 = vector.broadcast %84 : vector<8x1xf32> to vector<8x128xf32>
    %87 = arith.addf %85, %86 : vector<8x128xf32>
    %88 = arith.subf %87, %81 : vector<8x128xf32>
    %cst_31 = arith.constant 9.99999993E-9 : f32
    %89 = vector.broadcast %cst_31 : f32 to vector<8x128xf32>
    %90 = arith.maximumf %88, %89 : vector<8x128xf32>
    %91 = tpu.reciprocal %90 {approx = true} : vector<8x128xf32> -> vector<8x128xf32>
    %92 = arith.mulf %81, %91 : vector<8x128xf32>
    %cst_32 = arith.constant -1.000000e+00 : f32
    %93 = vector.shape_cast %62 : vector<8x1xi1> to vector<8x1xi1>
    %94 = vector.broadcast %93 : vector<8x1xi1> to vector<8x128xi1>
    %95 = vector.broadcast %cst_32 : f32 to vector<8x128xf32>
    %96 = arith.select %94, %92, %95 : vector<8x128xi1>, vector<8x128xf32>
    %cst_33 = arith.constant dense<0xFF800000> : vector<128xf32>
    %97 = vector.multi_reduction <maximumf>, %96, %cst_33 [0] : vector<8x128xf32> to vector<128xf32>
    %98 = vector.shape_cast %97 : vector<128xf32> to vector<1x128xf32>
    %99 = tpu.iota {dimensions = array<i32: 0>} : vector<8x128xi32>
    %100 = vector.broadcast %98 : vector<1x128xf32> to vector<8x128xf32>
    %101 = arith.cmpf oeq, %96, %100 : vector<8x128xf32>
    %c8_i32 = arith.constant 8 : i32
    %102 = vector.broadcast %c8_i32 : i32 to vector<8x128xi32>
    %103 = arith.select %101, %99, %102 : vector<8x128xi1>, vector<8x128xi32>
    %cst_34 = arith.constant dense<2147483647> : vector<128xi32>
    %104 = vector.multi_reduction <minsi>, %103, %cst_34 [0] : vector<8x128xi32> to vector<128xi32>
    %105 = vector.shape_cast %104 : vector<128xi32> to vector<1x128xi32>
    %106 = vector.broadcast %105 : vector<1x128xi32> to vector<8x128xi32>
    %107 = arith.cmpi eq, %99, %106 : vector<8x128xi32>
    %108 = arith.extui %107 : vector<8x128xi1> to vector<8x128xi32>
    %109 = arith.sitofp %108 : vector<8x128xi32> to vector<8x128xf32>
    %c0_35 = arith.constant 0 : index
    %c0_36 = arith.constant 0 : index
    %c0_37 = arith.constant 0 : index
    %110 = vector.load %arg9[%c0_35, %c0_36, %c0_37] : memref<1x5x8xf32, #tpu.memory_space<vmem>>, vector<1x5x8xf32>
    %111 = vector.shape_cast %110 : vector<1x5x8xf32> to vector<5x8xf32>
    %cst_38 = arith.constant dense<0.000000e+00> : vector<5x128xf32>
    %112 = tpu.matmul %111, %109, %cst_38 {dimension_numbers = #tpu.dot_dimension_numbers<[1], [0], [0], [1], [0, 0, 1, 1], [], []>} : vector<5x8xf32>, vector<8x128xf32>, vector<5x128xf32> -> vector<5x128xf32>
    %113 = vector.extract_strided_slice %112 {offsets = [0, 0], sizes = [1, 128], strides = [1, 1]} : vector<5x128xf32> to vector<1x128xf32>
    %114 = vector.extract_strided_slice %112 {offsets = [1, 0], sizes = [1, 128], strides = [1, 1]} : vector<5x128xf32> to vector<1x128xf32>
    %115 = vector.extract_strided_slice %112 {offsets = [2, 0], sizes = [1, 128], strides = [1, 1]} : vector<5x128xf32> to vector<1x128xf32>
    %116 = vector.extract_strided_slice %112 {offsets = [3, 0], sizes = [1, 128], strides = [1, 1]} : vector<5x128xf32> to vector<1x128xf32>
    %117 = vector.extract_strided_slice %112 {offsets = [4, 0], sizes = [1, 128], strides = [1, 1]} : vector<5x128xf32> to vector<1x128xf32>
    %cst_39 = arith.constant 5.000000e-01 : f32
    %118 = vector.broadcast %cst_39 : f32 to vector<1x128xf32>
    %119 = arith.cmpf oge, %98, %118 : vector<1x128xf32>
    %cst_40 = arith.constant 4.000000e-01 : f32
    %120 = vector.broadcast %cst_40 : f32 to vector<1x128xf32>
    %121 = arith.cmpf olt, %98, %120 : vector<1x128xf32>
    %122 = arith.extui %119 : vector<1x128xi1> to vector<1x128xi32>
    %123 = arith.sitofp %122 : vector<1x128xi32> to vector<1x128xf32>
    %124 = tpu.iota {dimensions = array<i32: 0>} : vector<8x128xi32>
    %125 = arith.fptosi %117 : vector<1x128xf32> to vector<1x128xi32>
    %126 = vector.broadcast %125 : vector<1x128xi32> to vector<8x128xi32>
    %127 = arith.cmpi eq, %124, %126 : vector<8x128xi32>
    %128 = arith.extui %127 : vector<8x128xi1> to vector<8x128xi32>
    %129 = arith.sitofp %128 : vector<8x128xi32> to vector<8x128xf32>
    %cst_41 = arith.constant 0.000000e+00 : f32
    %cst_42 = arith.constant -1.000000e+00 : f32
    %130 = vector.broadcast %cst_41 : f32 to vector<1x128xf32>
    %131 = vector.broadcast %cst_42 : f32 to vector<1x128xf32>
    %132 = arith.select %121, %130, %131 : vector<1x128xi1>, vector<1x128xf32>
    %133 = vector.shape_cast %119 : vector<1x128xi1> to vector<1x128xi1>
    %134 = vector.broadcast %133 : vector<1x128xi1> to vector<8x128xi1>
    %135 = vector.shape_cast %132 : vector<1x128xf32> to vector<1x128xf32>
    %136 = vector.broadcast %135 : vector<1x128xf32> to vector<8x128xf32>
    %137 = arith.select %134, %129, %136 : vector<8x128xi1>, vector<8x128xf32>
    %cst_43 = arith.constant 1.000000e+00 : f32
    %138 = vector.broadcast %cst_43 : f32 to vector<8x128xf32>
    %139 = arith.cmpf oeq, %137, %138 : vector<8x128xf32>
    %cst_44 = arith.constant 2.500000e-01 : f32
    %cst_45 = arith.constant 7.500000e-01 : f32
    %140 = vector.broadcast %cst_44 : f32 to vector<8x128xf32>
    %141 = vector.broadcast %cst_45 : f32 to vector<8x128xf32>
    %142 = arith.select %139, %140, %141 : vector<8x128xi1>, vector<8x128xf32>
    %cst_46 = arith.constant 1.000000e+00 : f32
    %143 = vector.broadcast %cst_46 : f32 to vector<8x128xf32>
    %144 = arith.cmpf oeq, %137, %143 : vector<8x128xf32>
    %cst_47 = arith.constant 1.000000e+00 : f32
    %145 = vector.broadcast %cst_47 : f32 to vector<8x128xf32>
    %146 = arith.subf %145, %47 : vector<8x128xf32>
    %147 = arith.select %144, %146, %47 : vector<8x128xi1>, vector<8x128xf32>
    %148 = arith.mulf %142, %147 : vector<8x128xf32>
    %149 = arith.mulf %148, %147 : vector<8x128xf32>
    %150 = arith.mulf %137, %50 : vector<8x128xf32>
    %cst_48 = arith.constant 1.000000e+00 : f32
    %151 = vector.broadcast %cst_48 : f32 to vector<8x128xf32>
    %152 = arith.subf %151, %137 : vector<8x128xf32>
    %153 = arith.mulf %152, %53 : vector<8x128xf32>
    %154 = arith.addf %150, %153 : vector<8x128xf32>
    %cst_49 = arith.constant 0.000000e+00 : f32
    %155 = vector.broadcast %cst_49 : f32 to vector<8x128xf32>
    %156 = arith.subf %155, %154 : vector<8x128xf32>
    %cst_50 = arith.constant -1.000000e+00 : f32
    %157 = vector.broadcast %cst_50 : f32 to vector<8x128xf32>
    %158 = arith.cmpf one, %137, %157 : vector<8x128xf32>
    %159 = arith.mulf %149, %156 : vector<8x128xf32>
    %cst_51 = arith.constant 0.000000e+00 : f32
    %160 = vector.broadcast %cst_51 : f32 to vector<8x128xf32>
    %161 = arith.select %158, %159, %160 : vector<8x128xi1>, vector<8x128xf32>
    %162 = arith.subf %115, %113 : vector<1x128xf32>
    %163 = arith.subf %116, %114 : vector<1x128xf32>
    %cst_52 = arith.constant 5.000000e-01 : f32
    %164 = vector.broadcast %cst_52 : f32 to vector<1x128xf32>
    %165 = arith.mulf %164, %162 : vector<1x128xf32>
    %166 = arith.addf %113, %165 : vector<1x128xf32>
    %cst_53 = arith.constant 5.000000e-01 : f32
    %167 = vector.broadcast %cst_53 : f32 to vector<1x128xf32>
    %168 = arith.mulf %167, %163 : vector<1x128xf32>
    %169 = arith.addf %114, %168 : vector<1x128xf32>
    %cst_54 = arith.constant 1.000000e+00 : f32
    %170 = vector.broadcast %cst_54 : f32 to vector<1x128xf32>
    %171 = arith.maximumf %162, %170 : vector<1x128xf32>
    %cst_55 = arith.constant 1.000000e+00 : f32
    %172 = vector.broadcast %cst_55 : f32 to vector<1x128xf32>
    %173 = arith.maximumf %163, %172 : vector<1x128xf32>
    %174 = arith.subf %169, %15 : vector<1x128xf32>
    %175 = arith.mulf %174, %20 : vector<1x128xf32>
    %176 = arith.subf %166, %12 : vector<1x128xf32>
    %177 = arith.mulf %176, %18 : vector<1x128xf32>
    %178 = arith.mulf %173, %20 : vector<1x128xf32>
    %179 = math.log %178 : vector<1x128xf32>
    %180 = arith.mulf %171, %18 : vector<1x128xf32>
    %181 = math.log %180 : vector<1x128xf32>
    %182 = tpu.concatenate %175, %177, %179, %181 in 0 : vector<1x128xf32>, vector<1x128xf32>, vector<1x128xf32>, vector<1x128xf32> -> vector<4x128xf32>
    %183 = arith.subf %182, %37 : vector<4x128xf32>
    %184 = math.absf %183 : vector<4x128xf32>
    %cst_56 = arith.constant 0.111111112 : f32
    %185 = vector.broadcast %cst_56 : f32 to vector<4x128xf32>
    %186 = arith.cmpf ole, %184, %185 : vector<4x128xf32>
    %cst_57 = arith.constant 4.500000e+00 : f32
    %187 = vector.broadcast %cst_57 : f32 to vector<4x128xf32>
    %188 = arith.mulf %187, %184 : vector<4x128xf32>
    %189 = arith.mulf %188, %184 : vector<4x128xf32>
    %cst_58 = arith.constant 0.055555556 : f32
    %190 = vector.broadcast %cst_58 : f32 to vector<4x128xf32>
    %191 = arith.subf %184, %190 : vector<4x128xf32>
    %192 = arith.select %186, %189, %191 : vector<4x128xi1>, vector<4x128xf32>
    %c0_59 = arith.constant 0 : index
    %c0_60 = arith.constant 0 : index
    %193 = vector.load %arg12[%c0_59, %c0_60] : memref<1x128xf32, #tpu.memory_space<vmem>>, vector<1x128xf32>
    %cst_61 = arith.constant dense<0.000000e+00> : vector<128xf32>
    %194 = vector.multi_reduction <add>, %161, %cst_61 [0] : vector<8x128xf32> to vector<128xf32>
    %195 = vector.shape_cast %194 : vector<128xf32> to vector<1x128xf32>
    %196 = arith.addf %193, %195 : vector<1x128xf32>
    %c0_62 = arith.constant 0 : index
    %c0_63 = arith.constant 0 : index
    %197 = vector.load %arg12[%c0_62, %c0_63] : memref<1x128xf32, #tpu.memory_space<vmem>>, vector<1x128xf32>
    tpu.vector_store %arg12[%c0_62, %c0_63], %196 {strides = array<i32>} : memref<1x128xf32, #tpu.memory_space<vmem>>, vector<1x128xf32>,
    %c0_64 = arith.constant 0 : index
    %c0_65 = arith.constant 0 : index
    %198 = vector.load %arg13[%c0_64, %c0_65] : memref<1x128xf32, #tpu.memory_space<vmem>>, vector<1x128xf32>
    %199 = vector.broadcast %123 : vector<1x128xf32> to vector<4x128xf32>
    %200 = arith.mulf %192, %199 : vector<4x128xf32>
    %cst_66 = arith.constant dense<0.000000e+00> : vector<128xf32>
    %201 = vector.multi_reduction <add>, %200, %cst_66 [0] : vector<4x128xf32> to vector<128xf32>
    %202 = vector.shape_cast %201 : vector<128xf32> to vector<1x128xf32>
    %203 = arith.addf %198, %202 : vector<1x128xf32>
    %c0_67 = arith.constant 0 : index
    %c0_68 = arith.constant 0 : index
    %204 = vector.load %arg13[%c0_67, %c0_68] : memref<1x128xf32, #tpu.memory_space<vmem>>, vector<1x128xf32>
    tpu.vector_store %arg13[%c0_67, %c0_68], %203 {strides = array<i32>} : memref<1x128xf32, #tpu.memory_space<vmem>>, vector<1x128xf32>,
    %c0_69 = arith.constant 0 : index
    %c0_70 = arith.constant 0 : index
    %205 = vector.load %arg14[%c0_69, %c0_70] : memref<1x128xf32, #tpu.memory_space<vmem>>, vector<1x128xf32>
    %206 = arith.addf %205, %123 : vector<1x128xf32>
    %c0_71 = arith.constant 0 : index
    %c0_72 = arith.constant 0 : index
    %207 = vector.load %arg14[%c0_71, %c0_72] : memref<1x128xf32, #tpu.memory_space<vmem>>, vector<1x128xf32>
    tpu.vector_store %arg14[%c0_71, %c0_72], %206 {strides = array<i32>} : memref<1x128xf32, #tpu.memory_space<vmem>>, vector<1x128xf32>,
    %c1_i32 = arith.constant 1 : i32
    %208 = arith.cmpi eq, %arg1, %c1_i32 : i32
    %209 = arith.extui %208 : i1 to i32
    %c0_i32_73 = arith.constant 0 : i32
    %210 = arith.cmpi ne, %209, %c0_i32_73 : i32
    scf.if %210 {
      %c0_74 = arith.constant 0 : index
      %c0_75 = arith.constant 0 : index
      %211 = vector.load %arg14[%c0_74, %c0_75] : memref<1x128xf32, #tpu.memory_space<vmem>>, vector<1x128xf32>
      %212 = vector.shape_cast %211 : vector<1x128xf32> to vector<1x1x128xf32>
      %cst_76 = arith.constant dense<0.000000e+00> : vector<1xf32>
      %213 = vector.multi_reduction <add>, %212, %cst_76 [1, 2] : vector<1x1x128xf32> to vector<1xf32>
      %214 = vector.shape_cast %213 : vector<1xf32> to vector<1x1x1xf32>
      %215 = vector.extract %214[0, 0, 0] : f32 from vector<1x1x1xf32>
      %c0_77 = arith.constant 0 : index
      %c0_78 = arith.constant 0 : index
      %216 = vector.load %arg12[%c0_77, %c0_78] : memref<1x128xf32, #tpu.memory_space<vmem>>, vector<1x128xf32>
      %217 = vector.shape_cast %216 : vector<1x128xf32> to vector<1x1x128xf32>
      %cst_79 = arith.constant dense<0.000000e+00> : vector<1xf32>
      %218 = vector.multi_reduction <add>, %217, %cst_79 [1, 2] : vector<1x1x128xf32> to vector<1xf32>
      %219 = vector.shape_cast %218 : vector<1xf32> to vector<1x1x1xf32>
      %220 = vector.extract %219[0, 0, 0] : f32 from vector<1x1x1xf32>
      %c0_80 = arith.constant 0 : index
      %c0_81 = arith.constant 0 : index
      %221 = vector.load %arg13[%c0_80, %c0_81] : memref<1x128xf32, #tpu.memory_space<vmem>>, vector<1x128xf32>
      %222 = vector.shape_cast %221 : vector<1x128xf32> to vector<1x1x128xf32>
      %cst_82 = arith.constant dense<0.000000e+00> : vector<1xf32>
      %223 = vector.multi_reduction <add>, %222, %cst_82 [1, 2] : vector<1x1x128xf32> to vector<1xf32>
      %224 = vector.shape_cast %223 : vector<1xf32> to vector<1x1x1xf32>
      %225 = vector.extract %224[0, 0, 0] : f32 from vector<1x1x1xf32>
      %cst_83 = arith.constant 1.000000e+00 : f32
      %226 = arith.maximumf %215, %cst_83 : f32
      %227 = arith.divf %220, %226 : f32
      %cst_84 = arith.constant 0.000000e+00 : f32
      %228 = arith.cmpf ogt, %215, %cst_84 : f32
      %cst_85 = arith.constant 4.000000e+00 : f32
      %229 = arith.mulf %cst_85, %215 : f32
      %cst_86 = arith.constant 1.000000e+00 : f32
      %230 = arith.maximumf %229, %cst_86 : f32
      %231 = arith.divf %225, %230 : f32
      %cst_87 = arith.constant 0.000000e+00 : f32
      %232 = arith.select %228, %231, %cst_87 : f32
      %233 = vector.broadcast %227 : f32 to vector<1x8x128xf32>
      %c0_88 = arith.constant 0 : index
      %c0_89 = arith.constant 0 : index
      %c0_90 = arith.constant 0 : index
      %234 = vector.load %arg10[%c0_88, %c0_89, %c0_90] : memref<1x8x128xf32, #tpu.memory_space<vmem>>, vector<1x8x128xf32>
      tpu.vector_store %arg10[%c0_88, %c0_89, %c0_90], %233 {strides = array<i32>} : memref<1x8x128xf32, #tpu.memory_space<vmem>>, vector<1x8x128xf32>,
      %235 = vector.broadcast %232 : f32 to vector<1x8x128xf32>
      %c0_91 = arith.constant 0 : index
      %c0_92 = arith.constant 0 : index
      %c0_93 = arith.constant 0 : index
      %236 = vector.load %arg11[%c0_91, %c0_92, %c0_93] : memref<1x8x128xf32, #tpu.memory_space<vmem>>, vector<1x8x128xf32>
      tpu.vector_store %arg11[%c0_91, %c0_92, %c0_93], %235 {strides = array<i32>} : memref<1x8x128xf32, #tpu.memory_space<vmem>>, vector<1x8x128xf32>,
    } else {
    }
    return
  }
  func.func @transform_0(%arg0: i32, %arg1: i32) -> (i32, i32, i32) {
    %c0_i32 = arith.constant 0 : i32
    %c0_i32_0 = arith.constant 0 : i32
    return %arg0, %c0_i32, %arg1 : i32, i32, i32
  }
  func.func @transform_1(%arg0: i32, %arg1: i32) -> (i32, i32) {
    %c0_i32 = arith.constant 0 : i32
    %c0_i32_0 = arith.constant 0 : i32
    %c0_i32_1 = arith.constant 0 : i32
    return %c0_i32, %c0_i32_0 : i32, i32
  }
  func.func @transform_2(%arg0: i32, %arg1: i32) -> (i32, i32) {
    %c0_i32 = arith.constant 0 : i32
    %c0_i32_0 = arith.constant 0 : i32
    %c0_i32_1 = arith.constant 0 : i32
    return %c0_i32, %c0_i32_0 : i32, i32
  }
  func.func @transform_3(%arg0: i32, %arg1: i32) -> (i32, i32) {
    %c0_i32 = arith.constant 0 : i32
    %c0_i32_0 = arith.constant 0 : i32
    %c0_i32_1 = arith.constant 0 : i32
    return %c0_i32, %c0_i32_0 : i32, i32
  }
  func.func @transform_4(%arg0: i32, %arg1: i32) -> (i32, i32) {
    %c0_i32 = arith.constant 0 : i32
    %c0_i32_0 = arith.constant 0 : i32
    %c0_i32_1 = arith.constant 0 : i32
    return %c0_i32, %c0_i32_0 : i32, i32
  }
  func.func @transform_5(%arg0: i32, %arg1: i32) -> (i32, i32) {
    %c0_i32 = arith.constant 0 : i32
    %c0_i32_0 = arith.constant 0 : i32
    return %c0_i32, %arg1 : i32, i32
  }
  func.func @transform_6(%arg0: i32, %arg1: i32) -> (i32, i32, i32) {
    %c0_i32 = arith.constant 0 : i32
    %c0_i32_0 = arith.constant 0 : i32
    %c0_i32_1 = arith.constant 0 : i32
    return %arg0, %c0_i32, %c0_i32_0 : i32, i32, i32
  }
  func.func @transform_7(%arg0: i32, %arg1: i32) -> (i32, i32, i32) {
    %c0_i32 = arith.constant 0 : i32
    %c0_i32_0 = arith.constant 0 : i32
    %c0_i32_1 = arith.constant 0 : i32
    return %arg0, %c0_i32, %c0_i32_0 : i32, i32, i32
  }
  func.func @transform_8(%arg0: i32, %arg1: i32) -> (i32, i32, i32) {
    %c0_i32 = arith.constant 0 : i32
    %c0_i32_0 = arith.constant 0 : i32
    %c0_i32_1 = arith.constant 0 : i32
    return %arg0, %c0_i32, %c0_i32_0 : i32, i32, i32
  }
  func.func @transform_9(%arg0: i32, %arg1: i32) -> (i32, i32, i32) {
    %c0_i32 = arith.constant 0 : i32
    %c0_i32_0 = arith.constant 0 : i32
    %c0_i32_1 = arith.constant 0 : i32
    return %arg0, %c0_i32, %c0_i32_0 : i32, i32, i32
  }
}

</mosaic_0001>

<bundles_post_ra>
// kernel: model_with_loss.1
= control target key start
LH: loop header
LB: loop body
LE: loop exit
PB: predicated region body
PF: predicated region fallthrough
CT: control target
= control target key end

     0   :  { %s1249_s30 = smov 0   ;;  %s1251_s10 = smov 0   ;;  %s1424_s0 = inlined_call_operand.vmem [shape: bf16[2,3,256], index: 0, kind: input, shape index: {}]   ;;  %s1425_s1 = inlined_call_operand.vmem [shape: bf16[32,3], index: 1, kind: input, shape index: {}]   ;;  %s1426_s2 = inlined_call_operand.vmem [shape: f32[32,1], index: 2, kind: input, shape index: {}]   ;;  %s1427_s3 = inlined_call_operand.vmem [shape: bf16[16,32], index: 3, kind: input, shape index: {}]   ;;  %s1428_s4 = inlined_call_operand.vmem [shape: f32[16,1], index: 4, kind: input, shape index: {}]   ;;  %s1429_s5 = inlined_call_operand.vmem [shape: f32[4,256], index: 5, kind: input, shape index: {}]   ;;  %s1430_s6 = inlined_call_operand.vmem [shape: f32[2,8,5], index: 6, kind: input, shape index: {}]   ;;  %s1431_s7 = inlined_call_operand.vmem [shape: f32[2,5,8], index: 7, kind: input, shape index: {}]   ;;  %s1432_s8 = inlined_call_operand.vmem [shape: f32[2,8,128], index: 8, kind: output, shape index: {0}]   ;;  %s1433_s9 = inlined_call_operand.vmem [shape: f32[2,8,128], index: 9, kind: output, shape index: {1}]  }
   0x1   :  { %s1253_s11 = smov 0   ;;  %s1255_s12 = smov 0  }
   0x2   :  { %s1257_s13 = smov 0  }
   0x3 LB: > { %1436 = sst [smem:[#allocation5_spill]] %s1175_s11  ;;  %s29_s14 = sadd.s32 1, %s1175_s11  ;;  %s1183_s13 = sphi %s1257_s13, %s20_s13   ;;  %s1179_s12 = sphi %s1255_s12, %s1443_s12   ;;  %s1175_s11 = sphi %s1253_s11, %s1442_s11   ;;  %s1171_s10 = sphi %s1251_s10, %s1441_s10   ;;  %s1167_s30 = sphi %s1249_s30, %s1440_s30  }
   0x4   : > { %1437 = sst [smem:[#allocation6_spill]] %s1179_s12  ;;  %s32_s15 = sadd.s32 1, %s1179_s12 }
   0x5   : > { %p30_p0 = scmp.ge.s32.totalorder %s29_s14, 2  ;;  %p1010_p1 = scmp.ge.s32.totalorder %s1183_s13, 1 }
   0x6   : > { %p334_p2 = scmp.lt.s32.totalorder %s1183_s13, 5 }
   0x7   : > { %s1445_s14 = smov (%p30_p0, %s29_s14), 0  ;;  %s1447_s15 = smov (!%p30_p0, %s32_s15), %s1179_s12 }
   0x8   : > { %1438 = sst [smem:[#allocation7_spill]] %s1445_s14  ;;  %p335_p3 = pnand %p1010_p1, %p334_p2 }
   0x9   : > { %p34_p4 = scmp.ge.s32.totalorder %s1447_s15, 2  ;;  %p388_p5 = scmp.lt.s32.totalorder (!%p335_p3), %s1171_s10, 1 }
   0xa   : > { %338 = sbr.rel (%p335_p3) target bundleno = 861 (0x35d), region = 52  ;;  %p390_p6 = scmp.lt.s32.totalorder (!%p335_p3), %s1167_s30, 1 }
   0xb   : > { %s1449_s15 = smov (%p34_p4, %s1447_s15), 0  ;;  %p1018_p7 = scmp.ne.s32.totalorder (!%p335_p3), %s1167_s30, 0 }
   0xc   : > { %1439 = sst [smem:[#allocation8_spill]] %s1449_s15 }
   0xf   : > { %s1451_s10 = smov (!%p388_p5, %s1171_s10), 1 }
  0x10   : > { %s391_s16 = scalar_select %p390_p6, %s1167_s30, 1 }
  0x11   : > { %s1011_s17 = sshll.u32 %s1451_s10, 1  ;;  %s1283_s18 = sshll.u32 %s1451_s10, 3 }
  0x12   : > { %s393_s19 = sadd.s32 %s1011_s17, %s391_s16  ;;  %s1013_s20 = sshll.u32 %s391_s16, 2 }
  0x13   : > { %s1012_s21 = sshll.u32 %s393_s19, 1  ;;  %s1288_s24 = scalar_lea.vmem %s1429_s5, %s1013_s20 }
  0x14   : > { %s395_s27 = scalar_lea.vmem %s1424_s0, %s1012_s21  ;;  %s403_s10 = scalar_lea.vmem %s1430_s6, %s1283_s18 }
  0x15   : > { %s407_s12 = scalar_lea.vmem %s1431_s7, %s1283_s18  ;;  %s411_s19 = scalar_lea.vmem %s1432_s8, %s1283_s18 }
  0x16   : > { %s415_s20 = scalar_lea.vmem %s1433_s9, %s1283_s18  ;;  %420 = sbr.rel (%p1018_p7) target bundleno = 31 (0x1f), region = 56 }
  0x1b   : > { %v1185_v0 = vmov 0.0  }
  0x1c   : > { %421 = vst [vmem:[#allocation2] sm:$0x1] %v1185_v0 }
  0x1d   : > { %422 = vst [vmem:[#allocation3] sm:$0x1] %v1185_v0 }
  0x1e   : > { %423 = vst [vmem:[#allocation4] sm:$0x1] %v1185_v0 }
  0x1f PF: > { %v579_v1 = vld [vmem:[%s403_s10] sm:$0xff]  ;;  %s1186_s21 = smov 2   ;;  %vm499_vm0 = vcmask 1040384   ;;  %vm500_vm1 = vcmask 1041408   ;;  %v1187_v3 = vmov 2   ;;  %v1188_v4 = vmov 65535  }
  0x20   : > { %611 = vrot.lane.b32.xlu0 %v579_v1, %s1186_s21  ;;  %v453_v2 = vld [vmem:[%s395_s27] sm:$0x3]  ;;  %1117 = vset.pattern.permute.xlu1 %v1187_v3  ;;  %v501_v5 = vsel %vm499_vm0, 4294967295, %v1188_v4  ;;  %v1045_v8 = vld [vmem:[%s1425_s1 + $0x8] sm:$0xff]  ;;  %vm492_vm2 = vcmask 23552   ;;  %v1189_v10 = vmov 0  }
  0x21   : > { %1121 = vset.pattern.permute.xlu0 %v1187_v3  ;;  %584 = vperm.xlu1 %1117, %v579_v1   ;;  %v502_v6 = vsel %vm500_vm1, %v501_v5, 0  ;;  %v1044_v9 = vld [vmem:[%s1425_s1] sm:$0xff]  ;;  %vm580_vm3 = vcmp.ne.f32.partialorder %v579_v1, -1.0  ;;  %v1190_v12 = vmov 4   ;;  %s1191_s25 = smov 127   ;;  %v1192_v15 = vmov 3  }
  0x22   : > { %v504_v7 = vand.u32 %v502_v6, %v453_v2  ;;  %v631_v11 = vsel %vm580_vm3, 1, %v1189_v10  ;;  %1119 = vset.pattern.permute.xlu2 %v1192_v15  ;;  %v461_v16 = vld [vmem:[%s1426_s2 + $0x18] sm:$0xff]  ;;  %v1193_v17 = vmov 1   ;;  %v533_v18 = vld [vmem:[%s1428_s4] sm:$0xff]  ;;  %v460_v19 = vld [vmem:[%s1426_s2 + $0x10] sm:$0xff]  ;;  %vm550_vm5 = vcmask 261120  }
  0x23   : > { %598 = vperm.xlu2 %1119, %v579_v1   ;;  %v458_v20 = vld [vmem:[%s1426_s2] sm:$0xff]  ;;  %v534_v23 = vld [vmem:[%s1428_s4 + $0x8] sm:$0xff]  ;;  %vm660_vm11 = vcmask 64512   ;;  %p1041_p8 = scmp.ne.s32.totalorder %s1167_s30, 1 }
  0x24   : > { %1047 = vmatpush.bf16.msra.mxu3 %v504_v7  ;;  %513 = vmatpush.bf16.msra.mxu0 %v504_v7  ;;  %v459_v24 = vld [vmem:[%s1426_s2 + $0x8] sm:$0xff]  ;;  %v1337_v39 = vld [vmem:[%s1288_s24] sm:$0xf] }
  0x25   : > { %v426_v40 = vrot.slane %v1337_v39, 6  ;;  %v581_v41 = vperm.slane %v1337_v39, 3  ;;  %v596_v43 = vperm.slane %v1337_v39, 2  ;;  %v602_v44 = vperm.slane %v1337_v39, 0 }
  0x26   : > { %v588_v45 = vperm.slane %v1337_v39, 1 }
  0x27   : > { %1028 = vmatmul.msk.bf16.vlgmr.msra.gmra.mxu3 %vm492_vm2, %v1045_v8  ;;  %1027 = vmatmul.msk.bf16.vlgmr.msra.gmra.mxu0 %vm492_vm2, %v1044_v9  ;;  %v1342_v42 = vsub.f32 %v1337_v39, %v426_v40  ;;  %v1046_v9 = vld [vmem:[%s1427_s3] sm:$0xff] }
  0x29   : > { %1118 = vset.pattern.permute.xlu1 %v1189_v10  ;;  %v435_v50 = vrot.slane %v1342_v42, 7  ;;  %vm443_vm13 = vweird.f32 %v1342_v42 }
  0x2a   : > { %590 = vperm.xlu1 %1118, %v579_v1  }
  0x2b   : > { %1120 = vset.pattern.permute.xlu2 %v1193_v17  ;;  %v437_v53 = vmul.f32 %v435_v50, %v1342_v42 }
  0x2c   : > { %604 = vperm.xlu2 %1120, %v579_v1  }
  0x2d   : > { %v620_v56 = vperm.slane %v437_v53, 3 }
  0x32   : > { %1122 = vset.pattern.permute.xlu1 %v1190_v12 }
  0x33   : > { %633 = vperm.xlu1 %1122, %v631_v11  }
  0x34   : > { %1123 = vset.pattern.permute.xlu2 %v1189_v10 }
  0x35   : > { %474 = vperm.xlu2 %1123, %v460_v19   ;;  %v786_v19 = vld [vmem:[#allocation4] sm:$0x1] }
  0x3b   : > { %1124 = vset.pattern.permute.xlu1 %v1189_v10 }
  0x3c   : > { %479 = vperm.xlu1 %1124, %v461_v16  }
  0x3d   : > { %464 = vperm.xlu2 %1123, %v458_v20  }
  0x44   : > { %537 = vperm.xlu1 %1124, %v533_v18  }
  0x45   : > { %542 = vperm.xlu2 %1123, %v534_v23  }
  0x7d   : > { %v599_v26 = vpop.permute.xlu2 %598 }
  0x7e   : > { %v601_v47 = vmin.f32 %v596_v43, %v599_v26 }
  0x86   : > { %v605_v30 = vpop.permute.xlu2 %604 }
  0x87   : > { %v607_v48 = vmax.f32 %v602_v44, %v605_v30  ;;  %v659_v30 = vld [vmem:[%s407_s12] sm:$0x1f]  ;;  %s1198_s12 = smov (!%p1041_p8), 1.0  }
  0x89   : > { %v608_v51 = vsub.f32 %v601_v47, %v607_v48  ;;  %v447_v47 = vand.u32 2147483647, %v1342_v42 }
  0x8b   : > { %v609_v54 = vmax.f32 %v608_v51, 0.0  ;;  %vm448_vm2 = vcmp.eq.f32.partialorder %v447_v47, 8.507059e+37 }
  0x8f   : > { %v475_v31 = vpop.permute.xlu2 %474 }
  0x92   : > { %v612_v13 = vpop.permute.xlu0 %611 }
  0x93   : > { %v614_v14 = vsub.f32 %v579_v1, %v612_v13  ;;  %v585_v25 = vpop.permute.xlu1 %584 }
  0x94   : > { %v587_v46 = vmin.f32 %v581_v41, %v585_v25 }
  0x95   : > { %616 = vrot.lane.b32.xlu0 %v614_v14, %s1191_s25 }
  0x97   : > { %v465_v62 = vpop.permute.xlu2 %464 }
  0x9c   : > { %v591_v27 = vpop.permute.xlu1 %590 }
  0x9d   : > { %v593_v49 = vmax.f32 %v588_v45, %v591_v27  ;;  %v449_v45 = vand.u32 2147483648, %v1342_v42 }
  0x9f   : > { %v594_v52 = vsub.f32 %v587_v46, %v593_v49  ;;  %v429_v49 = vmul.f32 0.5, %v1342_v42  ;;  %v450_v50 = vor.u32 1.1754944e-38, %v449_v45 }
  0xa1   : > { %v595_v55 = vmax.f32 %v594_v52, 0.0  ;;  %v431_v52 = vrot.slane %v429_v49, 2 }
  0xa3   : > { %v610_v59 = vmul.f32 %v609_v54, %v595_v55 }
  0xa4   : > { %v515_v57 = vpop.f32.mrf.mxu0 }
  0xa5   : > { %v634_v28 = vpop.permute.xlu1 %633  ;;  %v516_v0 = vadd.f32 %v515_v57, %v465_v62 }
  0xa6   : > { %vm635_vm4 = vcmp.eq.s32.totalorder %v634_v28, 1 }
  0xa7   : > { %v525_v3 = vmax.f32 %v516_v0, 0.0 }
  0xaa   : > { %v520_v29 = vpop.f32.mrf.mxu3 }
  0xab   : > { %v521_v34 = vadd.f32 %v520_v29, %v475_v31  ;;  %v1195_v31 = vmov 1.0  }
  0xac   : > { %v517_v1 = vpop.f32.mrf.mxu0 }
  0xad   : > { %v527_v36 = vmax.f32 %v521_v34, 0.0 }
  0xae   : > { %v480_v32 = vpop.permute.xlu1 %479 }
  0xb2   : > { %v522_v33 = vpop.f32.mrf.mxu3 }
  0xb3   : > { %v523_v35 = vadd.f32 %v522_v33, %v480_v32 }
  0xb5   : > { %v528_v37 = vmax.f32 %v523_v35, 0.0 }
  0xb6   : > { %v538_v32 = vpop.permute.xlu1 %537 }
  0xb7   : > { %v532_v38 = vpack.c.bf16 %v528_v37, %v527_v36 }
  0xb9   : > { %560 = vmatpush.bf16.msra.mxu1 %v532_v38 }
 0x107   : > { %v617_v21 = vpop.permute.xlu0 %616 }
 0x108   : > { %v619_v22 = vmul.f32 %v617_v21, %v614_v14  ;;  %v643_v14 = vlaneseq  ;;  %v1194_v21 = vmov 0.0  }
 0x10a   : > { %623 = vperm.xlu0 %1121, %v619_v22   ;;  %v1352_v17 = vshrl.u32 %v643_v14, 7 }
 0x112   : > { %1125 = vset.pattern.permute.xlu0 %v1189_v10 }
 0x113   : > { %469 = vperm.xlu0 %1125, %v459_v24  }
 0x11b   : > { %1126 = vset.pattern.permute.xlu0 %v1190_v12 }
 0x17c   : > { %v624_v58 = vpop.permute.xlu0 %623 }
 0x17d   : > { %v626_v60 = vadd.f32 %v624_v58, %v620_v56 }
 0x17f   : > { %v627_v61 = vsub.f32 %v626_v60, %v610_v59 }
 0x181   : > { %v628_v63 = vmax.f32 %v627_v61, 1e-08 }
 0x183   : > { %1127 = vrcp.f32 %v628_v63  ;;  %v433_v63 = vadd.f32 %v431_v52, %v1337_v39 }
 0x184   : > { %1129 = vrcp.f32 %v1342_v42 }
 0x185   : > { %v470_v2 = vpop.permute.xlu0 %469 }
 0x186   : > { %v518_v4 = vadd.f32 %v517_v1, %v470_v2 }
 0x188   : > { %v526_v5 = vmax.f32 %v518_v4, 0.0 }
 0x189   : > { %v1128_v6 = vpop.eup %1127 }
 0x18a   : > { %v630_v7 = vmul.f32 %v1128_v6, %v610_v59  ;;  %v531_v8 = vpack.c.bf16 %v526_v5, %v525_v3  ;;  %v1130_v37 = vpop.eup %1129 }
 0x18b   : > { %v439_v40 = vmul.f32 %v1130_v37, %v1342_v42  ;;  %vm444_vm14 = vweird.f32 %v1130_v37 }
 0x18c   : > { %v636_v10 = vsel %vm635_vm4, %v630_v7, -1.0  ;;  %561 = vmatpush.bf16.msra.mxu1 %v531_v8  ;;  %vm445_vm15 = vmor %vm443_vm13, %vm444_vm14  ;;  %v1196_v8 = vmov -1.0  }
 0x18d   : > { %v637_v11 = vrot.slane %v636_v10, 4  ;;  %v440_v41 = vsub.f32 1.0, %v439_v40 }
 0x18f   : > { %v638_v12 = vmax.f32 %v636_v10, %v637_v11  ;;  %1033 = vmatmul.msk.bf16.vlgmr.msra.gmra.mxu1 %vm550_vm5, %v1046_v9  ;;  %v441_v43 = vmul.f32 %v1130_v37, %v440_v41  ;;  %v728_v11 = vrot.slane %v433_v63, 1 }
 0x191   : > { %v639_v13 = vrot.slane %v638_v12, 2  ;;  %v442_v46 = vadd.f32 %v1130_v37, %v441_v43  ;;  %v543_v43 = vpop.permute.xlu2 %542 }
 0x193   : > { %v640_v15 = vmax.f32 %v638_v12, %v639_v13  ;;  %v446_v51 = vsel %vm445_vm15, %v1130_v37, %v442_v46 }
 0x194   : > { %v451_v53 = vsel %vm448_vm2, %v450_v50, %v446_v51 }
 0x195   : > { %v641_v16 = vrot.slane %v640_v15, 1  ;;  %v725_v60 = vrot.slane %v451_v53, 1  ;;  %v734_v61 = vrot.slane %v451_v53, 7 }
 0x197   : > { %v1354_v18 = vmax.f32 %v640_v15, %v641_v16  ;;  %v731_v15 = vrot.slane %v451_v53, 3 }
 0x199   : > { %vm645_vm6 = vcmp.eq.f32.partialorder %v636_v10, %v1354_v18  ;;  %vm684_vm7 = vcmp.ge.f32.partialorder %v1354_v18, 0.5  ;;  %vm685_vm4 = vcmp.lt.f32.partialorder %v1354_v18, 0.4  ;;  %v721_v10 = vrot.slane %v433_v63, 7 }
 0x19a   : > { %v646_v20 = vsel %vm645_vm6, %v1352_v17, 8  ;;  %v1362_v22 = vsel %vm684_vm7, 1.0, %v1194_v21  ;;  %v693_v9 = vsel %vm685_vm4, 0.0, %v1196_v8 }
 0x19b   : > { %v647_v23 = vrot.slane %v646_v20, 4  ;;  %v787_v24 = vadd.f32 %v1362_v22, %v786_v19 }
 0x19d   : > { %vm648_vm8 = vcmp.lt.s32.totalorder %v646_v20, %v647_v23  ;;  %788 = vst [vmem:[#allocation4] sm:$0x1] %v787_v24 }
 0x19e   : > { %v649_v25 = vsel %vm648_vm8, %v646_v20, %v647_v23 }
 0x19f   : > { %v650_v26 = vrot.slane %v649_v25, 2 }
 0x1a1   : > { %vm651_vm9 = vcmp.lt.s32.totalorder %v649_v25, %v650_v26 }
 0x1a2   : > { %v652_v27 = vsel %vm651_vm9, %v649_v25, %v650_v26 }
 0x1a3   : > { %v653_v28 = vrot.slane %v652_v27, 1 }
 0x1a5   : > { %vm654_vm10 = vcmp.lt.s32.totalorder %v652_v27, %v653_v28 }
 0x1a6   : > { %v655_v29 = vsel %vm654_vm10, %v652_v27, %v653_v28  ;;  %vm776_vm10 = vcmask 1043456  }
 0x1a7   : > { %vm656_vm12 = vcmp.eq.s32.totalorder %v1352_v17, %v655_v29 }
 0x1a8   : > { %1036 = vmatpush.msk.msra.mxu2 %vm656_vm12, %v1195_v31 }
 0x1a9   : > { %1037 = vmatmul.msk.f32.vlgmr.msra.gmra.mxu2 %vm660_vm11, %v659_v30 }
 0x20c   : > { %v563_v33 = vpop.f32.mrf.mxu1 }
 0x20d   : > { %v564_v34 = vadd.f32 %v563_v33, %v538_v32 }
 0x20f   : > { %v1034_v35 = vclamps-f32 %v564_v34, 9.21024 }
 0x211   : > { %v1372_v36 = vsub.f32 0.0, %v1034_v35 }
 0x213   : > { %v571_v38 = vmul.f32 1.442695, %v1372_v36 }
 0x214   : > { %v565_v37 = vpop.f32.mrf.mxu1 }
 0x215   : > { %1131 = vpow2.f32 %v571_v38  ;;  %v566_v47 = vadd.f32 %v565_v37, %v543_v43 }
 0x21b   : > { %v1132_v44 = vpop.eup %1131 }
 0x21c   : > { %v573_v48 = vadd.f32 1.0, %v1132_v44 }
 0x21e   : > { %1133 = vlog2.f32 %v573_v48 }
 0x21f   : > { %1135 = vrcp.f32 %v573_v48 }
 0x224   : > { %v1134_v62 = vpop.eup %1133 }
 0x225   : > { %v1136_v2 = vpop.eup %1135  ;;  %v576_v4 = vmul.f32 0.6931472, %v1134_v62  ;;  %v765_v62 = vld [vmem:[#allocation2] sm:$0x1] }
 0x226   : > { %v698_v13 = vsub.f32 1.0, %v1136_v2 }
 0x227   : > { %v577_v16 = vsub.f32 0.0, %v576_v4  ;;  %v578_v19 = vsub.f32 %v1372_v36, %v576_v4 }
 0x22c   : > { %v681_v54 = vpop.f32.mrf.mxu2 }
 0x22d   : > { %vm1048_vm3 = vcmp.lt.s32.totalorder %v681_v54, 0  ;;  %v1049_v55 = vceil.f32 %v681_v54  ;;  %v1050_v56 = vfloor.f32 %v681_v54  ;;  %v711_v57 = vrot.slane %v681_v54, 6 }
 0x22f   : > { %v1051_v58 = vsel %vm1048_vm3, %v1049_v55, %v1050_v56  ;;  %v713_v59 = vsub.f32 %v681_v54, %v711_v57 }
 0x230   : > { %v1052_v42 = vcvt.f32.s32 %v1051_v58 }
 0x231   : > { %v714_v0 = vmul.f32 0.5, %v713_v59  ;;  %v719_v1 = vmax.f32 %v713_v59, 1.0 }
 0x232   : > { %v689_v3 = vperm.slane %v1052_v42, 4 }
 0x233   : > { %v716_v5 = vrot.slane %v714_v0, 2  ;;  %v736_v6 = vmul.f32 %v734_v61, %v719_v1  ;;  %v739_v7 = vmul.f32 %v725_v60, %v719_v1 }
 0x234   : > { %vm690_vm5 = vcmp.eq.s32.totalorder %v1352_v17, %v689_v3  ;;  %v1197_v17 = vmov 0.75  }
 0x235   : > { %v1039_v12 = vsel %vm690_vm5, 1.0, %v1194_v21  ;;  %v718_v39 = vadd.f32 %v716_v5, %v681_v54  ;;  %1137 = vlog2.f32 %v736_v6 }
 0x236   : > { %v695_v14 = vsel %vm684_vm7, %v1039_v12, %v693_v9  ;;  %1139 = vlog2.f32 %v739_v7  ;;  %vm756_vm7 = vcmask 1042432   ;;  %v774_v7 = vld [vmem:[#allocation3] sm:$0x1] }
 0x237   : > { %vm696_vm6 = vcmp.eq.f32.partialorder %v695_v14, 1.0  ;;  %v703_v20 = vsub.f32 1.0, %v695_v14  ;;  %v723_v25 = vsub.f32 %v718_v39, %v721_v10  ;;  %v730_v26 = vsub.f32 %v718_v39, %v728_v11 }
 0x238   : > { %v697_v23 = vsel %vm696_vm6, 0.25, %v1197_v17  ;;  %v699_v24 = vsel %vm696_vm6, %v698_v13, %v1136_v2  ;;  %v702_v21 = vmul.f32 %v695_v14, %v577_v16  ;;  %vm707_vm8 = vcmp.ne.f32.partialorder %v695_v14, -1.0 }
 0x239   : > { %v700_v27 = vmul.f32 %v699_v24, %v697_v23  ;;  %v704_v28 = vmul.f32 %v703_v20, %v578_v19  ;;  %v727_v29 = vmul.f32 %v725_v60, %v723_v25  ;;  %v733_v30 = vmul.f32 %v731_v15, %v730_v26 }
 0x23b   : > { %v1138_v31 = vpop.eup %1137  ;;  %v705_v18 = vadd.f32 %v704_v28, %v702_v21  ;;  %v743_v34 = vrot.slane %v727_v29, 1  ;;  %v746_v35 = vrot.slane %v733_v30, 7  ;;  %v701_v36 = vmul.f32 %v700_v27, %v699_v24 }
 0x23c   : > { %v1140_v32 = vpop.eup %1139  ;;  %v738_v33 = vmul.f32 0.6931472, %v1138_v31 }
 0x23d   : > { %v706_v38 = vsub.f32 0.0, %v705_v18  ;;  %v741_v40 = vmul.f32 0.6931472, %v1140_v32  ;;  %v754_v46 = vsel %vm499_vm0, %v743_v34, %v746_v35 }
 0x23e   : > { %v749_v41 = vrot.slane %v738_v33, 1 }
 0x23f   : > { %v708_v44 = vmul.f32 %v706_v38, %v701_v36  ;;  %v752_v45 = vrot.slane %v741_v40, 7 }
 0x240   : > { %v755_v48 = vsel %vm500_vm1, %v754_v46, %v749_v41 }
 0x241   : > { %v709_v49 = vsel %vm707_vm8, %v708_v44, 0.0  ;;  %v757_v50 = vsel %vm756_vm7, %v755_v48, %v752_v45 }
 0x242   : > { %v758_v51 = vsub.f32 %v757_v50, %v566_v47  ;;  %v766_v52 = vrot.slane %v709_v49, 4 }
 0x244   : > { %v759_v53 = vand.u32 2147483647, %v758_v51  ;;  %v767_v54 = vadd.f32 %v766_v52, %v709_v49 }
 0x246   : > { %v761_v55 = vmul.f32 4.5, %v759_v53  ;;  %v768_v56 = vrot.slane %v767_v54, 2  ;;  %v1040_v58 = vadd.f32 -0.055555556, %v759_v53  ;;  %vm760_vm9 = vcmp.le.f32.partialorder %v759_v53, 0.11111111 }
 0x248   : > { %v762_v57 = vmul.f32 %v761_v55, %v759_v53  ;;  %v769_v59 = vadd.f32 %v768_v56, %v767_v54 }
 0x24a   : > { %v764_v60 = vsel %vm760_vm9, %v762_v57, %v1040_v58  ;;  %v770_v61 = vrot.slane %v769_v59, 1 }
 0x24b   : > { %v775_v63 = vmul.f32 %v1362_v22, %v764_v60 }
 0x24c   : > { %v771_v42 = vadd.f32 %v770_v61, %v769_v59 }
 0x24d   : > { %v777_v0 = vsel %vm776_vm10, %v775_v63, 0.0 }
 0x24e   : > { %v772_v1 = vadd.f32 %v771_v42, %v765_v62  ;;  %v778_v2 = vrot.slane %v777_v0, 4 }
 0x250   : > { %773 = vst [vmem:[#allocation2] sm:$0x1] %v772_v1  ;;  %v779_v3 = vadd.f32 %v778_v2, %v777_v0 }
 0x252   : > { %v780_v4 = vrot.slane %v779_v3, 2 }
 0x254   : > { %v781_v5 = vadd.f32 %v780_v4, %v779_v3 }
 0x256   : > { %v782_v6 = vrot.slane %v781_v5, 1 }
 0x258   : > { %v783_v8 = vadd.f32 %v782_v6, %v781_v5  ;;  %792 = sbr.rel (%p1041_p8) target bundleno = 861 (0x35d), region = 60 }
 0x25a   : > { %v784_v9 = vadd.f32 %v783_v8, %v774_v7 }
 0x25c   : > { %785 = vst [vmem:[#allocation3] sm:$0x1] %v784_v9 }
 0x25d   : > { %v793_v10 = vld [vmem:[#allocation4] sm:$0x1]  ;;  %v804_v39 = vld [vmem:[#allocation2] sm:$0x1] }
 0x25e   : > { %v794_v22 = vsel %vm499_vm0, %v793_v10, 0.0  ;;  %v805_v13 = vsel %vm499_vm0, %v804_v39, 0.0 }
 0x25f   : > { %795 = vadd.xlane.f32.xlu0 %v794_v22 }
 0x263   : > { %v815_v11 = vld [vmem:[#allocation3] sm:$0x1] }
 0x264   : > { %v816_v12 = vsel %vm499_vm0, %v815_v11, 0.0 }
 0x265   : > { %817 = vadd.xlane.f32.xlu1 %v816_v12 }
 0x267   : > { %806 = vadd.xlane.f32.xlu0 %v805_v13 }
 0x2d2   : > { %v796_v14 = vpop.xlane.xlu0 %795 }
 0x2d3   : > { %v797_v15 = vrot.slane %v796_v14, 4 }
 0x2d5   : > { %v798_v16 = vadd.f32 %v797_v15, %v796_v14 }
 0x2d7   : > { %v799_v19 = vrot.slane %v798_v16, 2 }
 0x2d8   : > { %v818_v24 = vpop.xlane.xlu1 %817 }
 0x2d9   : > { %v800_v20 = vadd.f32 %v799_v19, %v798_v16  ;;  %v819_v26 = vrot.slane %v818_v24, 4 }
 0x2da   : > { %v807_v25 = vpop.xlane.xlu0 %806 }
 0x2db   : > { %v801_v17 = vrot.slane %v800_v20, 1  ;;  %v808_v27 = vrot.slane %v807_v25, 4  ;;  %v820_v21 = vadd.f32 %v819_v26, %v818_v24 }
 0x2dd   : > { %v802_v23 = vadd.f32 %v801_v17, %v800_v20  ;;  %v809_v28 = vadd.f32 %v808_v27, %v807_v25  ;;  %v821_v29 = vrot.slane %v820_v21, 2 }
 0x2df   : > { %1053 = vpush %v802_v23  ;;  %v810_v30 = vrot.slane %v809_v28, 2  ;;  %v822_v31 = vadd.f32 %v821_v29, %v820_v21 }
 0x2e1   : > { %v811_v18 = vadd.f32 %v810_v30, %v809_v28  ;;  %v823_v33 = vrot.slane %v822_v31, 1 }
 0x2e3   : > { %v812_v32 = vrot.slane %v811_v18, 1  ;;  %v824_v35 = vadd.f32 %v823_v33, %v822_v31 }
 0x2e5   : > { %v813_v34 = vadd.f32 %v812_v32, %v811_v18 }
 0x2e7   : > { %1055 = vpush %v813_v34 }
 0x2e8   : > { %1057 = vpush %v824_v35 }
 0x310   : > { %s1394_s30 = spop %1053 }
 0x311   : > { %s826_s27 = smax.f32 %s1198_s12, %s1394_s30  ;;  %s845_s28 = smul.f32 4.0, %s1394_s30 }
 0x312   : > { %v827_v37 = vstv %s826_s27  ;;  %p844_p9 = scmp.gt.f32.partialorder %s1394_s30, 0.0 }
 0x313   : > { %1141 = vrcp.f32 %v827_v37  ;;  %s846_s29 = smax.f32 %s1198_s12, %s845_s28  ;;  %v839_v44 = vand.u32 2147483648, %v827_v37  ;;  %v837_v47 = vand.u32 2147483647, %v827_v37  ;;  %vm833_vm1 = vweird.f32 %v827_v37 }
 0x314   : > { %v847_v36 = vstv %s846_s29 }
 0x315   : > { %1143 = vrcp.f32 %v847_v36  ;;  %v859_v50 = vand.u32 2147483648, %v847_v36  ;;  %v840_v51 = vor.u32 1.1754944e-38, %v839_v44  ;;  %v857_v53 = vand.u32 2147483647, %v847_v36 }
 0x316   : > { %vm838_vm13 = vcmp.eq.f32.partialorder %v837_v47, 8.507059e+37  ;;  %vm853_vm14 = vweird.f32 %v847_v36 }
 0x317   : > { %v860_v57 = vor.u32 1.1754944e-38, %v859_v50  ;;  %vm858_vm2 = vcmp.eq.f32.partialorder %v857_v53, 8.507059e+37 }
 0x318   : > { %s1056_s10 = spop %1055 }
 0x319   : > { %v1142_v38 = vpop.eup %1141  ;;  %s1058_s17 = spop %1057 }
 0x31a   : > { %v829_v40 = vmul.f32 %v1142_v38, %v827_v37  ;;  %vm834_vm0 = vweird.f32 %v1142_v38 }
 0x31b   : > { %v1144_v41 = vpop.eup %1143  ;;  %vm835_vm11 = vmor %vm833_vm1, %vm834_vm0 }
 0x31c   : > { %v830_v43 = vsub.f32 1.0, %v829_v40  ;;  %v849_v45 = vmul.f32 %v1144_v41, %v847_v36  ;;  %vm854_vm12 = vweird.f32 %v1144_v41 }
 0x31d   : > { %vm855_vm15 = vmor %vm853_vm14, %vm854_vm12 }
 0x31e   : > { %v831_v46 = vmul.f32 %v1142_v38, %v830_v43  ;;  %v850_v48 = vsub.f32 1.0, %v849_v45 }
 0x320   : > { %v832_v49 = vadd.f32 %v1142_v38, %v831_v46  ;;  %v851_v52 = vmul.f32 %v1144_v41, %v850_v48 }
 0x322   : > { %v836_v54 = vsel %vm835_vm11, %v1142_v38, %v832_v49  ;;  %v852_v56 = vadd.f32 %v1144_v41, %v851_v52 }
 0x323   : > { %v841_v55 = vsel %vm838_vm13, %v840_v51, %v836_v54 }
 0x324   : > { %1059 = vpush %v841_v55  ;;  %v856_v58 = vsel %vm855_vm15, %v1144_v41, %v852_v56 }
 0x325   : > { %v861_v59 = vsel %vm858_vm2, %v860_v57, %v856_v58 }
 0x326   : > { %1061 = vpush %v861_v59 }
 0x355   : > { %s1060_s16 = spop %1059 }
 0x356   : > { %s843_s22 = smul.f32 %s1060_s16, %s1056_s10 }
 0x357   : > { %s1062_s21 = spop %1061 }
 0x358   : > { %v865_v60 = vstv %s843_s22  ;;  %s863_s15 = smul.f32 %s1062_s21, %s1058_s17 }
 0x359   : > { %866 = vst [vmem:[%s411_s19] sm:$0xff] %v865_v60 }
 0x35a   : > { %s1453_s15 = smov (!%p844_p9, %s863_s15), 0.0 }
 0x35b   : > { %v867_v61 = vstv %s1453_s15 }
 0x35c   : > { %868 = vst [vmem:[%s415_s20] sm:$0xff] %v867_v61 }
 0x35d PF: > { %s20_s13 = sadd.s32 1, %s1183_s13   ;;  %s1440_s30 = sld [smem:[#allocation5_spill]] }
 0x35e   : > { %p17_p10 = scmp.ge.s32.totalorder %s20_s13, 6   ;;  %s1441_s10 = sld [smem:[#allocation6_spill]] }
 0x35f   : > { %s1442_s11 = sld [smem:[#allocation7_spill]] }
 0x360   : > { %s1443_s12 = sld [smem:[#allocation8_spill]]  ;;  %19 = sbr.rel (!%p17_p10) target bundleno = 3 (0x3), region = 111 }

</bundles_post_ra>
